<compile_context>
chip_gen: v5e
topology: v5e:2x2
jax: 0.10.0
libtpu: 0.0.40
codegen_flags: <defaults>
</compile_context>

<pallas_src>
import functools

import jax
import jax.numpy as jnp
from jax import lax
from jax.experimental import pallas as pl
from jax.experimental.pallas import tpu as pltpu


def _round_up(x, m):
    return ((x + m - 1) // m) * m


def _vmem_capacity_bytes():
    """Trace-time VMEM capacity query; conservative fallback if unavailable."""
    try:
        info = pltpu.get_tpu_info()
        cap = getattr(info, "vmem_capacity_bytes", None)
        if cap:
            return int(cap)
    except Exception:
        pass
    return 64 * 1024 * 1024  # v7x per-TC VMEM (smallest current generation)


def _pick_tile_t(T, N, stream_bytes, align, budget_bytes):
    """Largest sublane-aligned T-tile whose double-buffered enc_out+enc_feat
    tiles (with 128-lane padding) fit the budget.  T is later padded up to a
    multiple of the chosen tile, so no divisibility fallback is needed."""
    NP = _round_up(N, 128)                       # lanes are padded in VMEM
    per_row = 2 * 2 * stream_bytes * NP          # 2 tensors x 2 pipeline buffers
    cap_rows = max(align, budget_bytes // per_row)
    tile_t = min(_round_up(T, align), (cap_rows // align) * align)
    return max(align, tile_t)


def _make_kernel(N, T, T_pad, tile_t):
    f32 = jnp.float32

    def kernel(dec_hx_ref, enc_out_ref, enc_feat_ref, mask_ref,
               wscore_ref, wout_ref, out_ref,
               dec_feat_sc, v_sc, m_sc, l_sc, acc_sc):
        t_idx = pl.program_id(1)
        n_t = pl.num_programs(1)

        # ---- per-batch init (first T-tile): cache W_s(dec_hx)+b and the v row,
        #      reset the online-softmax accumulators.  Only the needed slices of
        #      the param slab Refs are read, and only once per batch.
        @pl.when(t_idx == 0)
        def _init():
            dec_row = dec_hx_ref[0]                                   # (1, N)
            dec_feat_sc[...] = (
                jnp.dot(dec_row, wscore_ref[pl.ds(0, N), :],
                        preferred_element_type=f32)
                + wscore_ref[pl.ds(N, 1), :])                         # (1, N)
            v_sc[...] = wscore_ref[pl.ds(N + 1, 1), :]                # (1, N)
            m_sc[...] = jnp.full_like(m_sc, -jnp.inf)
            l_sc[...] = jnp.zeros_like(l_sc)
            acc_sc[...] = jnp.zeros_like(acc_sc)

        # ---- scores for this tile, lane-dense (1, tile_t).
        # bf16 tiles are upcast after the DMA; compute stays f32 everywhere.
        e = jnp.tanh(enc_feat_ref[0].astype(f32) + dec_feat_sc[...])  # (tile_t, N)
        s = lax.dot_general(v_sc[...], e, (((1,), (1,)), ((), ())),
                            preferred_element_type=f32)               # (1, tile_t)
        # (v bias omitted: softmax over T is shift-invariant.)
        if T_pad != T:
            # Remove padded rows from the softmax (denominator must stay
            # unmasked only w.r.t. the user mask, never the padding).
            col = t_idx * tile_t + lax.broadcasted_iota(jnp.int32, (1, tile_t), 1)
            s = jnp.where(col < T, s, -jnp.inf)

        # ---- online softmax over T (denominator UNMASKED, matching the
        #      module's post-softmax masking with no renormalization).
        m_prev = m_sc[...]
        m_new = jnp.maximum(m_prev, jnp.max(s, axis=1, keepdims=True))
        alpha = jnp.exp(m_prev - m_new)
        p = jnp.exp(s - m_new)                                         # (1, tile_t)
        l_sc[...] = alpha * l_sc[...] + jnp.sum(p, axis=1, keepdims=True)

        # ---- masked weighted content partial (MXU): (1,tile_t) @ (tile_t,N).
        # Mask is resident for the whole batch; slice the current tile's row.
        pm = p * mask_ref[0, pl.ds(t_idx, 1), :]                       # (1, tile_t)
        acc_sc[...] = alpha * acc_sc[...] + jnp.dot(
            pm, enc_out_ref[0].astype(f32), preferred_element_type=f32)
        m_sc[...] = m_new

        # ---- finalize on the last T-tile: normalize, fused output linear, store.
        @pl.when(t_idx == n_t - 1)
        def _finalize():
            content = acc_sc[...] / l_sc[...]             # exact, once per batch
            cat = jnp.concatenate([content, dec_hx_ref[0]], axis=1)   # (1, 2N)
            h = (jnp.dot(cat, wout_ref[pl.ds(0, 2 * N), :],
                         preferred_element_type=f32)
                 + wout_ref[pl.ds(2 * N, 1), :])          # (1, NP) lane-dense
            out_ref[0] = jnp.tanh(h)

    return kernel


def prepare_attention_state(encoder_outputs, encoder_feature, mask_tensor,
                            ws_w, ws_b, v_w, v_b, lin_w, lin_b,
                            *, tile_t=None, stream_dtype=jnp.bfloat16):
    """Decode-invariant prep (layout, precision, padding, param slabs).

    NOTE: this performs a full HBM read+write of the encoder tensors; in an
    autoregressive decoder loop it MUST be called once and hoisted out of the
    per-step loop.
    """
    del v_b  # softmax is shift-invariant -> v's bias never changes the output
    T, B, N = encoder_outputs.shape
    NP = _round_up(N, 128)
    f32 = jnp.float32
    stream_bytes = jnp.dtype(stream_dtype).itemsize
    align = 16 if stream_bytes < 4 else 8     # bf16 packs 16 rows per sublane tile

    # Generation-aware VMEM budgets (v7x: 64 MiB/TC, v5e/v6e: 128 MiB).
    vmem_cap = _vmem_capacity_bytes()
    param_bytes = 4 * 2 * (_round_up(N + 2, 8) * NP + _round_up(2 * N + 1, 8) * NP)
    vmem_limit = min(int(vmem_cap * 0.8), 112 * 1024 * 1024)
    tile_budget = max(4 * 1024 * 1024,
                      min(int(vmem_cap * 0.6), 96 * 1024 * 1024)
                      - param_bytes - (2 << 20))

    if tile_t is None:
        tile_t = _pick_tile_t(T, N, stream_bytes, align, tile_budget)
    assert tile_t % align == 0, (tile_t, align)
    T_pad = _round_up(T, tile_t)
    n_t = T_pad // tile_t

    # Batch-major (B, T, N), bf16-streamed encoder tensors; lane-dense mask.
    enc_out_b = jnp.transpose(encoder_outputs, (1, 0, 2)).astype(stream_dtype)
    enc_feat_b = jnp.transpose(encoder_feature, (1, 0, 2)).astype(stream_dtype)
    mask_b = jnp.transpose(mask_tensor[:, :, 0], (1, 0)).astype(f32)   # (B, T)
    if T_pad != T:
        pad3 = ((0, 0), (0, T_pad - T), (0, 0))
        enc_out_b = jnp.pad(enc_out_b, pad3)
        enc_feat_b = jnp.pad(enc_feat_b, pad3)
        mask_b = jnp.pad(mask_b, ((0, 0), (0, T_pad - T)))
    mask_b = mask_b.reshape(B, n_t, tile_t)

    # Score-path slab: rows [0:N]=W_s^T, [N]=W_s bias, [N+1]=v row (lane axis).
    wscore = jnp.zeros((N + 2, N), f32)
    wscore = wscore.at[:N, :].set(ws_w.T.astype(f32))
    wscore = wscore.at[N, :].set(ws_b.astype(f32))
    wscore = wscore.at[N + 1, :].set(v_w.astype(f32)[0])

    # Output-path slab, lane-padded to NP for an unmasked lane-dense store.
    wout = jnp.zeros((2 * N + 1, NP), f32)
    wout = wout.at[:2 * N, :N].set(lin_w.T.astype(f32))
    wout = wout.at[2 * N, :N].set(lin_b.astype(f32))

    meta = dict(T=T, T_pad=T_pad, B=B, N=N, NP=NP, tile_t=tile_t, n_t=n_t,
                vmem_limit=vmem_limit, stream_dtype=stream_dtype)
    return (enc_out_b, enc_feat_b, mask_b, wscore, wout), meta


def attention_forward_prepared(decoder_hx, state, meta):
    enc_out_b, enc_feat_b, mask_b, wscore, wout = state
    T, T_pad, B, N, NP = meta["T"], meta["T_pad"], meta["B"], meta["N"], meta["NP"]
    tile_t, n_t = meta["tile_t"], meta["n_t"]
    f32 = jnp.float32
    stream_bytes = jnp.dtype(meta["stream_dtype"]).itemsize

    dec_hx3 = decoder_hx.astype(f32).reshape(B, 1, N)

    flops = B * (2 * N * N + 2 * T_pad * N + 2 * T_pad * N + 2 * (2 * N) * NP)
    transcendentals = B * (T_pad * N + T_pad + 2 * n_t + NP)
    bytes_accessed = (2 * B * T_pad * N * stream_bytes + 4 * B * T_pad
                      + 4 * B * N + 4 * (N + 2) * N + 4 * (2 * N + 1) * NP
                      + 4 * B * NP)

    kernel = _make_kernel(N, T, T_pad, tile_t)

    out = pl.pallas_call(
        kernel,
        out_shape=jax.ShapeDtypeStruct((B, 1, NP), f32),
        grid_spec=pltpu.PrefetchScalarGridSpec(
            num_scalar_prefetch=0,
            grid=(B, n_t),
            in_specs=[
                pl.BlockSpec((1, 1, N), lambda b, t: (b, 0, 0)),         # decoder_hx
                pl.BlockSpec((1, tile_t, N), lambda b, t: (b, t, 0)),    # encoder_outputs (bf16 stream)
                pl.BlockSpec((1, tile_t, N), lambda b, t: (b, t, 0)),    # encoder_feature (bf16 stream)
                pl.BlockSpec((1, n_t, tile_t), lambda b, t: (b, 0, 0)),  # mask, resident per batch
                pl.BlockSpec((N + 2, N), lambda b, t: (0, 0)),           # score param slab
                pl.BlockSpec((2 * N + 1, NP), lambda b, t: (0, 0)),      # output param slab
            ],
            out_specs=pl.BlockSpec((1, 1, NP), lambda b, t: (b, 0, 0)),
            scratch_shapes=[
                pltpu.VMEM((1, N), f32),   # cached dec_feature = W_s(dec_hx) + b
                pltpu.VMEM((1, N), f32),   # v row, hoisted once per batch
                pltpu.VMEM((1, 1), f32),   # running max
                pltpu.VMEM((1, 1), f32),   # running (unmasked) softmax denominator
                pltpu.VMEM((1, N), f32),   # running masked weighted sum
            ],
        ),
        compiler_params=pltpu.CompilerParams(
            dimension_semantics=("parallel", "arbitrary"),
            vmem_limit_bytes=meta["vmem_limit"]),
        cost_estimate=pl.CostEstimate(flops=flops,
                                      transcendentals=transcendentals,
                                      bytes_accessed=bytes_accessed),
    )(dec_hx3, enc_out_b, enc_feat_b, mask_b, wscore, wout)

    return out[:, 0, :N]


def attention_forward(decoder_hx, encoder_outputs, encoder_feature, mask_tensor,
                      ws_w, ws_b, v_w, v_b, lin_w, lin_b,
                      *, tile_t=None, stream_dtype=jnp.bfloat16):
    """Convenience one-shot wrapper; hoist prepare_attention_state() in real use."""
    state, meta = prepare_attention_state(
        encoder_outputs, encoder_feature, mask_tensor,
        ws_w, ws_b, v_w, v_b, lin_w, lin_b,
        tile_t=tile_t, stream_dtype=stream_dtype)
    return attention_forward_prepared(decoder_hx, state, meta)


def attention_reference(decoder_hx, encoder_outputs, encoder_feature, mask_tensor,
                        ws_w, ws_b, v_w, v_b, lin_w, lin_b):
    dec_feature = decoder_hx @ ws_w.T + ws_b
    e = jnp.tanh(encoder_feature + dec_feature[None])
    scores = e @ v_w.T + v_b                          # (T, B, 1)
    attn = jax.nn.softmax(scores, axis=0) * mask_tensor
    content = jnp.sum(attn * encoder_outputs, axis=0)
    concat = jnp.concatenate([content, decoder_hx], axis=1)
    return jnp.tanh(concat @ lin_w.T + lin_b)


if __name__ == "__main__":
    # hidden_size = 32; T = 32 with tile_t = 16 so the online softmax runs 2 steps.
    T, B, N = 32, 2, 32
    key = jax.random.PRNGKey(0)
    ks = jax.random.split(key, 10)

    decoder_hx = jax.random.normal(ks[0], (B, N), jnp.float32)
    encoder_outputs = jax.random.normal(ks[1], (T, B, N), jnp.float32)
    encoder_feature = jax.random.normal(ks[2], (T, B, N), jnp.float32)
    mask_tensor = (jax.random.uniform(ks[3], (T, B, 1)) > 0.25).astype(jnp.float32)

    ws_w = jax.random.normal(ks[4], (N, N), jnp.float32) * 0.1       # W_s.weight
    ws_b = jax.random.normal(ks[5], (N,), jnp.float32) * 0.1         # W_s.bias
    v_w = jax.random.normal(ks[6], (1, N), jnp.float32) * 0.1        # v.weight
    v_b = jax.random.normal(ks[7], (1,), jnp.float32) * 0.1          # v.bias
    lin_w = jax.random.normal(ks[8], (N, 2 * N), jnp.float32) * 0.1  # linear.weight
    lin_b = jax.random.normal(ks[9], (N,), jnp.float32) * 0.1        # linear.bias

    out = attention_forward(decoder_hx, encoder_outputs, encoder_feature,
                            mask_tensor, ws_w, ws_b, v_w, v_b, lin_w, lin_b,
                            tile_t=16, stream_dtype=jnp.bfloat16)
    out = jax.block_until_ready(out)
    assert out.shape == (B, N)

    # The kernel deliberately streams the encoder tensors in bf16 (HBM-bound
    # path); validate the kernel logic against a reference fed the same
    # bf16-rounded encoder data.  All in-kernel arithmetic is f32.
    enc_out_q = encoder_outputs.astype(jnp.bfloat16).astype(jnp.float32)
    enc_feat_q = encoder_feature.astype(jnp.bfloat16).astype(jnp.float32)
    ref = attention_reference(decoder_hx, enc_out_q, enc_feat_q, mask_tensor,
                              ws_w, ws_b, v_w, v_b, lin_w, lin_b)
    assert jnp.allclose(out, ref, atol=2e-3, rtol=2e-3), "mismatch vs reference"
    print("KERNEL_OK")
</pallas_src>

<mosaic_0001>
module attributes {stable_mosaic.version = 11 : i64} {
  func.func @kernel(%arg0: i32, %arg1: i32, %arg2: memref<1x1x32xf32, #tpu.memory_space<vmem>>, %arg3: memref<1x16x32xbf16, #tpu.memory_space<vmem>>, %arg4: memref<1x16x32xbf16, #tpu.memory_space<vmem>>, %arg5: memref<1x2x16xf32, #tpu.memory_space<vmem>>, %arg6: memref<34x32xf32, #tpu.memory_space<vmem>>, %arg7: memref<65x128xf32, #tpu.memory_space<vmem>>, %arg8: memref<1x1x128xf32, #tpu.memory_space<vmem>>, %arg9: memref<1x32xf32, #tpu.memory_space<vmem>>, %arg10: memref<1x32xf32, #tpu.memory_space<vmem>>, %arg11: memref<1x1xf32, #tpu.memory_space<vmem>>, %arg12: memref<1x1xf32, #tpu.memory_space<vmem>>, %arg13: memref<1x32xf32, #tpu.memory_space<vmem>>) attributes {dimension_semantics = [#tpu.dimension_semantics<parallel>, #tpu.dimension_semantics<arbitrary>], iteration_bounds = array<i64: 2, 2>, scalar_prefetch = 0 : i64, scratch_operands = 5 : i64, tpu.core_type = #tpu.core_type<tc>, window_params = [{transform_indices = @transform_0, window_bounds = array<i64: 1, 1, 32>}, {transform_indices = @transform_1, window_bounds = array<i64: 1, 16, 32>}, {transform_indices = @transform_2, window_bounds = array<i64: 1, 16, 32>}, {transform_indices = @transform_3, window_bounds = array<i64: 1, 2, 16>}, {pipeline_mode = #tpu.pipeline_mode<synchronous>, transform_indices = @transform_4, window_bounds = array<i64: 34, 32>}, {pipeline_mode = #tpu.pipeline_mode<synchronous>, transform_indices = @transform_5, window_bounds = array<i64: 65, 128>}, {transform_indices = @transform_6, window_bounds = array<i64: 1, 1, 128>}]} {
    %c0_i32 = arith.constant 0 : i32
    %0 = arith.cmpi eq, %arg1, %c0_i32 : i32
    %1 = arith.extui %0 : i1 to i32
    %c0_i32_0 = arith.constant 0 : i32
    %2 = arith.cmpi ne, %1, %c0_i32_0 : i32
    scf.if %2 {
      %c0_28 = arith.constant 0 : index
      %c0_29 = arith.constant 0 : index
      %c0_30 = arith.constant 0 : index
      %44 = vector.load %arg2[%c0_28, %c0_29, %c0_30] : memref<1x1x32xf32, #tpu.memory_space<vmem>>, vector<1x1x32xf32>
      %45 = vector.shape_cast %44 : vector<1x1x32xf32> to vector<1x32xf32>
      %c0_31 = arith.constant 0 : index
      %c0_32 = arith.constant 0 : index
      %46 = vector.load %arg6[%c0_31, %c0_32] : memref<34x32xf32, #tpu.memory_space<vmem>>, vector<32x32xf32>
      %cst_33 = arith.constant dense<0.000000e+00> : vector<1x32xf32>
      %47 = tpu.matmul %45, %46, %cst_33 {dimension_numbers = #tpu.dot_dimension_numbers<[1], [0], [0], [1], [0, 0, 1, 1], [], []>} : vector<1x32xf32>, vector<32x32xf32>, vector<1x32xf32> -> vector<1x32xf32>
      %c32 = arith.constant 32 : index
      %c0_34 = arith.constant 0 : index
      %48 = vector.load %arg6[%c32, %c0_34] : memref<34x32xf32, #tpu.memory_space<vmem>>, vector<1x32xf32>
      %49 = arith.addf %47, %48 : vector<1x32xf32>
      %c0_35 = arith.constant 0 : index
      %c0_36 = arith.constant 0 : index
      %50 = vector.load %arg9[%c0_35, %c0_36] : memref<1x32xf32, #tpu.memory_space<vmem>>, vector<1x32xf32>
      tpu.vector_store %arg9[%c0_35, %c0_36], %49 {strides = array<i32>} : memref<1x32xf32, #tpu.memory_space<vmem>>, vector<1x32xf32>,
      %c33 = arith.constant 33 : index
      %c0_37 = arith.constant 0 : index
      %51 = vector.load %arg6[%c33, %c0_37] : memref<34x32xf32, #tpu.memory_space<vmem>>, vector<1x32xf32>
      %c0_38 = arith.constant 0 : index
      %c0_39 = arith.constant 0 : index
      %52 = vector.load %arg10[%c0_38, %c0_39] : memref<1x32xf32, #tpu.memory_space<vmem>>, vector<1x32xf32>
      tpu.vector_store %arg10[%c0_38, %c0_39], %51 {strides = array<i32>} : memref<1x32xf32, #tpu.memory_space<vmem>>, vector<1x32xf32>,
      %cst_40 = arith.constant 0xFF800000 : f32
      %53 = vector.broadcast %cst_40 : f32 to vector<1x1xf32>
      %c0_41 = arith.constant 0 : index
      %c0_42 = arith.constant 0 : index
      %54 = vector.load %arg11[%c0_41, %c0_42] : memref<1x1xf32, #tpu.memory_space<vmem>>, vector<1x1xf32>
      tpu.vector_store %arg11[%c0_41, %c0_42], %53 {strides = array<i32>} : memref<1x1xf32, #tpu.memory_space<vmem>>, vector<1x1xf32>,
      %cst_43 = arith.constant 0.000000e+00 : f32
      %55 = vector.broadcast %cst_43 : f32 to vector<1x1xf32>
      %c0_44 = arith.constant 0 : index
      %c0_45 = arith.constant 0 : index
      %56 = vector.load %arg12[%c0_44, %c0_45] : memref<1x1xf32, #tpu.memory_space<vmem>>, vector<1x1xf32>
      tpu.vector_store %arg12[%c0_44, %c0_45], %55 {strides = array<i32>} : memref<1x1xf32, #tpu.memory_space<vmem>>, vector<1x1xf32>,
      %cst_46 = arith.constant 0.000000e+00 : f32
      %57 = vector.broadcast %cst_46 : f32 to vector<1x32xf32>
      %c0_47 = arith.constant 0 : index
      %c0_48 = arith.constant 0 : index
      %58 = vector.load %arg13[%c0_47, %c0_48] : memref<1x32xf32, #tpu.memory_space<vmem>>, vector<1x32xf32>
      tpu.vector_store %arg13[%c0_47, %c0_48], %57 {strides = array<i32>} : memref<1x32xf32, #tpu.memory_space<vmem>>, vector<1x32xf32>,
    } else {
    }
    %c0 = arith.constant 0 : index
    %c0_1 = arith.constant 0 : index
    %c0_2 = arith.constant 0 : index
    %3 = vector.load %arg4[%c0, %c0_1, %c0_2] : memref<1x16x32xbf16, #tpu.memory_space<vmem>>, vector<1x16x32xbf16>
    %4 = vector.shape_cast %3 : vector<1x16x32xbf16> to vector<16x32xbf16>
    %5 = arith.extf %4 : vector<16x32xbf16> to vector<16x32xf32>
    %c0_3 = arith.constant 0 : index
    %c0_4 = arith.constant 0 : index
    %6 = vector.load %arg9[%c0_3, %c0_4] : memref<1x32xf32, #tpu.memory_space<vmem>>, vector<1x32xf32>
    %7 = vector.broadcast %6 : vector<1x32xf32> to vector<16x32xf32>
    %8 = arith.addf %5, %7 : vector<16x32xf32>
    %9 = math.tanh %8 : vector<16x32xf32>
    %c0_5 = arith.constant 0 : index
    %c0_6 = arith.constant 0 : index
    %10 = vector.load %arg10[%c0_5, %c0_6] : memref<1x32xf32, #tpu.memory_space<vmem>>, vector<1x32xf32>
    %cst = arith.constant dense<0.000000e+00> : vector<1x16xf32>
    %11 = tpu.matmul %10, %9, %cst {dimension_numbers = #tpu.dot_dimension_numbers<[1], [1], [0], [0], [0, 0, 1, 0], [], []>} : vector<1x32xf32>, vector<16x32xf32>, vector<1x16xf32> -> vector<1x16xf32>
    %c0_7 = arith.constant 0 : index
    %c0_8 = arith.constant 0 : index
    %12 = vector.load %arg11[%c0_7, %c0_8] : memref<1x1xf32, #tpu.memory_space<vmem>>, vector<1x1xf32>
    %cst_9 = arith.constant dense<0xFF800000> : vector<1xf32>
    %13 = vector.multi_reduction <maximumf>, %11, %cst_9 [1] : vector<1x16xf32> to vector<1xf32>
    %14 = vector.shape_cast %13 : vector<1xf32> to vector<1x1xf32>
    %15 = arith.maximumf %12, %14 : vector<1x1xf32>
    %16 = arith.subf %12, %15 : vector<1x1xf32>
    %17 = math.exp %16 : vector<1x1xf32>
    %18 = vector.broadcast %15 : vector<1x1xf32> to vector<1x16xf32>
    %19 = arith.subf %11, %18 : vector<1x16xf32>
    %20 = math.exp %19 : vector<1x16xf32>
    %c0_10 = arith.constant 0 : index
    %c0_11 = arith.constant 0 : index
    %21 = vector.load %arg12[%c0_10, %c0_11] : memref<1x1xf32, #tpu.memory_space<vmem>>, vector<1x1xf32>
    %22 = arith.mulf %17, %21 : vector<1x1xf32>
    %cst_12 = arith.constant dense<0.000000e+00> : vector<1xf32>
    %23 = vector.multi_reduction <add>, %20, %cst_12 [1] : vector<1x16xf32> to vector<1xf32>
    %24 = vector.shape_cast %23 : vector<1xf32> to vector<1x1xf32>
    %25 = arith.addf %22, %24 : vector<1x1xf32>
    %c0_13 = arith.constant 0 : index
    %c0_14 = arith.constant 0 : index
    %26 = vector.load %arg12[%c0_13, %c0_14] : memref<1x1xf32, #tpu.memory_space<vmem>>, vector<1x1xf32>
    tpu.vector_store %arg12[%c0_13, %c0_14], %25 {strides = array<i32>} : memref<1x1xf32, #tpu.memory_space<vmem>>, vector<1x1xf32>,
    %c0_15 = arith.constant 0 : index
    %27 = arith.index_cast %arg1 : i32 to index
    %c0_16 = arith.constant 0 : index
    %28 = vector.load %arg5[%c0_15, %27, %c0_16] : memref<1x2x16xf32, #tpu.memory_space<vmem>>, vector<1x1x16xf32>
    %29 = vector.shape_cast %28 : vector<1x1x16xf32> to vector<1x16xf32>
    %30 = arith.mulf %20, %29 : vector<1x16xf32>
    %c0_17 = arith.constant 0 : index
    %c0_18 = arith.constant 0 : index
    %31 = vector.load %arg13[%c0_17, %c0_18] : memref<1x32xf32, #tpu.memory_space<vmem>>, vector<1x32xf32>
    %32 = vector.broadcast %17 : vector<1x1xf32> to vector<1x32xf32>
    %33 = arith.mulf %32, %31 : vector<1x32xf32>
    %c0_19 = arith.constant 0 : index
    %c0_20 = arith.constant 0 : index
    %c0_21 = arith.constant 0 : index
    %34 = vector.load %arg3[%c0_19, %c0_20, %c0_21] : memref<1x16x32xbf16, #tpu.memory_space<vmem>>, vector<1x16x32xbf16>
    %35 = vector.shape_cast %34 : vector<1x16x32xbf16> to vector<16x32xbf16>
    %36 = arith.extf %35 : vector<16x32xbf16> to vector<16x32xf32>
    %cst_22 = arith.constant dense<0.000000e+00> : vector<1x32xf32>
    %37 = tpu.matmul %30, %36, %cst_22 {dimension_numbers = #tpu.dot_dimension_numbers<[1], [0], [0], [1], [0, 0, 1, 1], [], []>} : vector<1x16xf32>, vector<16x32xf32>, vector<1x32xf32> -> vector<1x32xf32>
    %38 = arith.addf %33, %37 : vector<1x32xf32>
    %c0_23 = arith.constant 0 : index
    %c0_24 = arith.constant 0 : index
    %39 = vector.load %arg13[%c0_23, %c0_24] : memref<1x32xf32, #tpu.memory_space<vmem>>, vector<1x32xf32>
    tpu.vector_store %arg13[%c0_23, %c0_24], %38 {strides = array<i32>} : memref<1x32xf32, #tpu.memory_space<vmem>>, vector<1x32xf32>,
    %c0_25 = arith.constant 0 : index
    %c0_26 = arith.constant 0 : index
    %40 = vector.load %arg11[%c0_25, %c0_26] : memref<1x1xf32, #tpu.memory_space<vmem>>, vector<1x1xf32>
    tpu.vector_store %arg11[%c0_25, %c0_26], %15 {strides = array<i32>} : memref<1x1xf32, #tpu.memory_space<vmem>>, vector<1x1xf32>,
    %c1_i32 = arith.constant 1 : i32
    %41 = arith.cmpi eq, %arg1, %c1_i32 : i32
    %42 = arith.extui %41 : i1 to i32
    %c0_i32_27 = arith.constant 0 : i32
    %43 = arith.cmpi ne, %42, %c0_i32_27 : i32
    scf.if %43 {
      %c0_28 = arith.constant 0 : index
      %c0_29 = arith.constant 0 : index
      %44 = vector.load %arg13[%c0_28, %c0_29] : memref<1x32xf32, #tpu.memory_space<vmem>>, vector<1x32xf32>
      %c0_30 = arith.constant 0 : index
      %c0_31 = arith.constant 0 : index
      %45 = vector.load %arg12[%c0_30, %c0_31] : memref<1x1xf32, #tpu.memory_space<vmem>>, vector<1x1xf32>
      %46 = vector.broadcast %45 : vector<1x1xf32> to vector<1x32xf32>
      %47 = arith.divf %44, %46 : vector<1x32xf32>
      %c0_32 = arith.constant 0 : index
      %c0_33 = arith.constant 0 : index
      %c0_34 = arith.constant 0 : index
      %48 = vector.load %arg2[%c0_32, %c0_33, %c0_34] : memref<1x1x32xf32, #tpu.memory_space<vmem>>, vector<1x1x32xf32>
      %49 = vector.shape_cast %48 : vector<1x1x32xf32> to vector<1x32xf32>
      %50 = tpu.concatenate %47, %49 in 1 : vector<1x32xf32>, vector<1x32xf32> -> vector<1x64xf32>
      %c0_35 = arith.constant 0 : index
      %c0_36 = arith.constant 0 : index
      %51 = vector.load %arg7[%c0_35, %c0_36] : memref<65x128xf32, #tpu.memory_space<vmem>>, vector<64x128xf32>
      %cst_37 = arith.constant dense<0.000000e+00> : vector<1x128xf32>
      %52 = tpu.matmul %50, %51, %cst_37 {dimension_numbers = #tpu.dot_dimension_numbers<[1], [0], [0], [1], [0, 0, 1, 1], [], []>} : vector<1x64xf32>, vector<64x128xf32>, vector<1x128xf32> -> vector<1x128xf32>
      %c64 = arith.constant 64 : index
      %c0_38 = arith.constant 0 : index
      %53 = vector.load %arg7[%c64, %c0_38] : memref<65x128xf32, #tpu.memory_space<vmem>>, vector<1x128xf32>
      %54 = arith.addf %52, %53 : vector<1x128xf32>
      %55 = math.tanh %54 : vector<1x128xf32>
      %c0_39 = arith.constant 0 : index
      %c0_40 = arith.constant 0 : index
      %c0_41 = arith.constant 0 : index
      %56 = vector.load %arg8[%c0_39, %c0_40, %c0_41] : memref<1x1x128xf32, #tpu.memory_space<vmem>>, vector<1x1x128xf32>
      %57 = vector.shape_cast %56 : vector<1x1x128xf32> to vector<1x128xf32>
      %58 = vector.shape_cast %55 : vector<1x128xf32> to vector<1x1x128xf32>
      tpu.vector_store %arg8[%c0_39, %c0_40, %c0_41], %58 {strides = array<i32>} : memref<1x1x128xf32, #tpu.memory_space<vmem>>, vector<1x1x128xf32>,
    } else {
    }
    return
  }
  func.func @transform_0(%arg0: i32, %arg1: i32) -> (i32, i32, i32) {
    %c0_i32 = arith.constant 0 : i32
    %c0_i32_0 = arith.constant 0 : i32
    %c0_i32_1 = arith.constant 0 : i32
    return %arg0, %c0_i32, %c0_i32_0 : i32, i32, i32
  }
  func.func @transform_1(%arg0: i32, %arg1: i32) -> (i32, i32, i32) {
    %c0_i32 = arith.constant 0 : i32
    %c0_i32_0 = arith.constant 0 : i32
    return %arg0, %arg1, %c0_i32 : i32, i32, i32
  }
  func.func @transform_2(%arg0: i32, %arg1: i32) -> (i32, i32, i32) {
    %c0_i32 = arith.constant 0 : i32
    %c0_i32_0 = arith.constant 0 : i32
    return %arg0, %arg1, %c0_i32 : i32, i32, i32
  }
  func.func @transform_3(%arg0: i32, %arg1: i32) -> (i32, i32, i32) {
    %c0_i32 = arith.constant 0 : i32
    %c0_i32_0 = arith.constant 0 : i32
    %c0_i32_1 = arith.constant 0 : i32
    return %arg0, %c0_i32, %c0_i32_0 : i32, i32, i32
  }
  func.func @transform_4(%arg0: i32, %arg1: i32) -> (i32, i32) {
    %c0_i32 = arith.constant 0 : i32
    %c0_i32_0 = arith.constant 0 : i32
    %c0_i32_1 = arith.constant 0 : i32
    return %c0_i32, %c0_i32_0 : i32, i32
  }
  func.func @transform_5(%arg0: i32, %arg1: i32) -> (i32, i32) {
    %c0_i32 = arith.constant 0 : i32
    %c0_i32_0 = arith.constant 0 : i32
    %c0_i32_1 = arith.constant 0 : i32
    return %c0_i32, %c0_i32_0 : i32, i32
  }
  func.func @transform_6(%arg0: i32, %arg1: i32) -> (i32, i32, i32) {
    %c0_i32 = arith.constant 0 : i32
    %c0_i32_0 = arith.constant 0 : i32
    %c0_i32_1 = arith.constant 0 : i32
    return %arg0, %c0_i32, %c0_i32_0 : i32, i32, i32
  }
}

</mosaic_0001>

<bundles_post_ra>
// kernel: tpu_custom_call.1
= control target key start
LH: loop header
LB: loop body
LE: loop exit
PB: predicated region body
PF: predicated region fallthrough
CT: control target
= control target key end

     0   :  { %s1510_s0 = inlined_call_operand.hbm [shape: f32[2,1,32], index: 0, kind: input, shape index: {}]   ;;  %s1511_s1 = inlined_call_operand.hbm [shape: bf16[2,32,32], index: 1, kind: input, shape index: {}]   ;;  %s1512_s2 = inlined_call_operand.hbm [shape: bf16[2,32,32], index: 2, kind: input, shape index: {}]   ;;  %s1513_s3 = inlined_call_operand.vmem [shape: f32[2,2,16], index: 3, kind: input, shape index: {}]   ;;  %s1514_s4 = inlined_call_operand.vmem [shape: f32[34,32], index: 4, kind: input, shape index: {}]   ;;  %s1515_s5 = inlined_call_operand.vmem [shape: f32[65,128], index: 5, kind: input, shape index: {}]   ;;  %s1516_s6 = inlined_call_operand.hbm [shape: f32[2,1,128], index: 6, kind: output, shape index: {}]  }
   0x1   :  { %1526 = sst [smem:[#allocation22_spill]] %s1511_s1 }
   0x2   :  { %1527 = sst [smem:[#allocation23_spill]] %s1512_s2 }
   0x3   :  { %1528 = sst [smem:[#allocation24_spill]] %s1513_s3 }
   0x4   :  { %1529 = sst [smem:[#allocation25_spill]] %s1514_s4 }
   0x5   :  { %1530 = sst [smem:[#allocation26_spill]] %s1515_s5 }
   0x6   :  { %1531 = sst [smem:[#allocation27_spill]] %s1516_s6 }
   0x7   :  { %11 = vsyncpa [#allocation8], 0 }
   0x8   :  { %13 = vsyncpa [#allocation8 + $0x1], 0 }
   0x9   :  { %14 = vsyncpa [#allocation11], 0 }
   0xa   :  { %16 = vsyncpa [#allocation11 + $0x1], 0 }
   0xb   :  { %17 = vsyncpa [#allocation9], 0 }
   0xc   :  { %19 = vsyncpa [#allocation9 + $0x1], 0  ;;  %s1185_s21 = smov 0   ;;  %s1187_s22 = smov 0  }
   0xd   :  { %s1189_s23 = smov 0   ;;  %s1191_s24 = smov 0  }
   0xe   :  { %s1193_s25 = smov 0   ;;  %s1195_s26 = smov 0  }
   0xf   :  { %s1197_s27 = smov 0   ;;  %s1199_s28 = smov 0  }
  0x10   :  { %s1201_s29 = smov 0   ;;  %s1203_s30 = smov 0  }
  0x11   :  { %s1205_s7 = smov 0  }
  0x12 LB: > { %1532 = sst [smem:[#allocation17_spill]] %s1125_s27  ;;  %s34_s8 = sadd.s32 1, %s1133_s29  ;;  %s1141_s7 = sphi %s1205_s7, %s25_s7   ;;  %s1137_s30 = sphi %s1203_s30, %s1566_s30   ;;  %s1133_s29 = sphi %s1201_s29, %s1557_s29   ;;  %s1129_s28 = sphi %s1199_s28, %s1565_s28   ;;  %s1125_s27 = sphi %s1197_s27, %s1556_s27   ;;  %s1121_s26 = sphi %s1195_s26, %s1564_s26   ;;  %s1117_s25 = sphi %s1193_s25, %s1563_s25   ;;  %s1113_s24 = sphi %s1191_s24, %s1562_s24   ;;  %s1109_s23 = sphi %s1189_s23, %s1561_s23   ;;  %s1105_s22 = sphi %s1187_s22, %s1560_s22   ;;  %s1101_s21 = sphi %s1185_s21, %s1559_s21  }
  0x13   : > { %1533 = sst [smem:[#allocation18_spill]] %s1133_s29  ;;  %p35_p0 = scmp.ge.s32.totalorder %s34_s8, 2 }
  0x14   : > { %s37_s9 = sadd.s32 1, %s1137_s30  ;;  %p52_p1 = scmp.eq.s32.totalorder %s1141_s7, 0 }
  0x15   : > { %p79_p2 = scmp.ne.s32.totalorder %s1109_s23, %s1105_s22  ;;  %s1568_s8 = smov (%p35_p0, %s34_s8), 0 }
  0x16   : > { %1534 = sst [smem:[#allocation19_spill]] %s1568_s8  ;;  %s1570_s9 = smov (!%p35_p0, %s37_s9), %s1137_s30 }
  0x17   : > { %s68_s10 = ssub.s32 %s1133_s29, %s1568_s8  ;;  %s72_s11 = sadd.s32 1, %s1109_s23 }
  0x18   : > { %p39_p3 = scmp.ge.s32.totalorder %s1570_s9, 2  ;;  %p1253_p4 = por %p79_p2, %p52_p1 }
  0x19   : > { %p811_p5 = scmp.lt.s32.totalorder %s1141_s7, 4  ;;  %s254_s13 = sand.u32 1, %s1141_s7  }
  0x1a   : > { %s1572_s9 = smov (%p39_p3, %s1570_s9), 0  ;;  %s256_s14 = sand.u32 1, %s1109_s23  }
  0x1b   : > { %1536 = sst [smem:[#allocation20_spill]] %s1572_s9  ;;  %s1264_s15 = ssub.s32 %s1137_s30, %s1572_s9 }
  0x1c   : > { %s69_s16 = sor.u32 %s68_s10, %s1264_s15  ;;  %s759_s17 = sshll.u32 %s256_s14, 3 }
  0x1d   : > { %p70_p6 = scmp.eq.s32.totalorder %s69_s16, 0  ;;  %s760_s18 = sshll.u32 %s1133_s29, 1 }
  0x1e   : > { %s761_s19 = sshll.u32 %s1137_s30, 2  ;;  %s258_s6 = scalar_lea.vmem [#allocation10], %s759_s17 }
  0x1f   : > { %s1270_s20 = scalar_select %p70_p6, %s1109_s23, %s72_s11  }
  0x20   : > { %s263_s8 = sadd.s32 %s761_s19, %s760_s18  ;;  %s268_s5 = sshll.u32 %s258_s6, 4  ;;  %s269_s5 = int_to_ptr.vmem [resolvable:$true] %s268_s5 }
  0x21   : > { %s762_s4 = sshll.u32 %s263_s8, 2  ;;  %s1537_s1 = sld [smem:[#allocation22_spill]] }
  0x22   : > { %p1279_p7 = pnand %p811_p5, %p1253_p4  ;;  %s1283_s6 = scalar_lea.sflag [#allocation11], %s254_s13 }
  0x23   : > { %s1523_s8 = smov 64   ;;  %s1524_s3 = smov 4  }
  0x24   : > { %s1539_s2 = sld [smem:[#allocation23_spill]]  ;;  %s282_s13 = scalar_lea.vmem [#allocation12], %s759_s17 }
  0x25   : > { %s1294_s14 = sshll.u32 %s282_s13, 4  ;;  %p85_p8 = scmp.ne.s32.totalorder %s1105_s22, %s1101_s21  ;;  %s293_s14 = int_to_ptr.vmem [resolvable:$true] %s1294_s14 }
  0x26   : > { %p767_p9 = scmp.ge.s32.totalorder %s1141_s7, 1  ;;  %p307_p10 = scmp.lt.s32.totalorder %s1141_s7, 5 }
  0x27   : > { %s265_s9 = scalar_lea.hbm %s1537_s1, %s762_s4  ;;  %p42_p12 = scmp.eq.s32.totalorder %s1264_s15, 0 }
  0x28   : > { %s266_s11 = sshll.u32 %s265_s9, 4  ;;  %p1301_p11 = pnand %p767_p9, %p307_p10  ;;  %s267_s11 = int_to_ptr.hbm [resolvable:$true] %s266_s11 }
  0x29   : > { %803 = dma.hbm_to_vmem [thread:$0]  (!%p1279_p7), %s267_s11, 128, %s269_s5, %s1283_s6, %s1523_s8, %s1523_s8, %s1524_s3  }
  0x2a   : > { %s289_s12 = scalar_lea.hbm %s1539_s2, %s762_s4  ;;  %s1306_s5 = sadd.s32 4294967295, %s1141_s7  }
  0x2b   : > { %s290_s16 = sshll.u32 %s289_s12, 4  ;;  %s756_s4 = sadd.s32 4294967294, %s1141_s7   ;;  %s291_s16 = int_to_ptr.hbm [resolvable:$true] %s290_s16 }
  0x2c   : > { %s44_s17 = sadd.s32 1, %s1121_s26  ;;  %p51_p13 = scmp.ne.s32.totalorder %s1121_s26, %s1117_s25 }
  0x2d   : > { %p57_p0 = scmp.ne.s32.totalorder %s1117_s25, %s1113_s24  ;;  %p58_p3 = scmp.eq.s32.totalorder %s1306_s5, 0 }
  0x2e   : > { %s1316_s19 = scalar_select %p42_p12, %s1121_s26, %s44_s17  }
  0x2f   : > { %p1320_p2 = por %p52_p1, %p51_p13  ;;  %p205_p4 = scmp.eq.s32.totalorder %s1306_s5, 3 }
  0x30   : > { %1541 = sst [smem:[#allocation21_spill]] %s1316_s19  ;;  %p211_p6 = scmp.eq.s32.totalorder %s756_s4, 3 }
  0x31   : > { %p1326_p9 = por %p58_p3, %p57_p0  ;;  %p1333_p10 = por %p85_p8, %p58_p3 }
  0x32   : > { %p1337_p1 = por %p205_p4, %p51_p13  ;;  %p1341_p12 = por %p211_p6, %p57_p0 }
  0x33   : > { %s237_s13 = sand.u32 1, %s1121_s26   ;;  %s243_s8 = scalar_lea.hbm %s1510_s0, %s1137_s30 }
  0x34   : > { %s245_s3 = sshll.u32 %s243_s8, 4  ;;  %s240_s21 = scalar_lea.vmem [#allocation7], %s237_s13  ;;  %s246_s3 = int_to_ptr.hbm [resolvable:$true] %s245_s3 }
  0x35   : > { %s247_s1 = sshll.u32 %s240_s21, 4  ;;  %p798_p8 = pnand %p811_p5, %p1320_p2  ;;  %s248_s1 = int_to_ptr.vmem [resolvable:$true] %s247_s1 }
  0x36   : > { %s1547_s2 = smov 4   ;;  %s1548_s29 = smov 64  }
  0x37   : > { %806 = dma.hbm_to_vmem [thread:$0]  (!%p1279_p7), %s291_s16, 128, %s293_s14, %s1283_s6, %s1548_s29, %s1548_s29, %s1547_s2  }
  0x38   : > { %s238_s19 = scalar_lea.sflag [#allocation8], %s237_s13  ;;  %311 = sbr.rel (%p1301_p11) target bundleno = 1041 (0x411), region = 44 }
  0x39   : > { %800 = dma.hbm_to_vmem [thread:$0]  (!%p798_p8), %s246_s3, 16, %s248_s1, %s238_s19  }
  0x3a   : > { %s1365_s8 = sand.u32 (!%p1301_p11), 1, %s1117_s25  }
  0x3b   : > { %s314_s11 = scalar_lea.sflag (!%p1301_p11), [#allocation8], %s1365_s8  ;;  %s316_s17 = scalar_lea.vmem (!%p1301_p11), [#allocation7], %s1365_s8 }
  0x3d   : > { %1088 = dma.done.wait (%p1326_p9), %s314_s11, 16  }
  0x3e   : > { %1090 = vsyncadd (%p1326_p9), %s314_s11, 4294967280  ;;  %s322_s1 = sand.u32 1, %s1306_s5   ;;  %s324_s2 = sand.u32 1, %s1105_s22  }
  0x3f   : > { %s1375_s29 = sshll.u32 %s324_s2, 3  ;;  %s323_s10 = scalar_lea.sflag [#allocation11], %s322_s1 }
  0x40   : > { %s326_s6 = scalar_lea.vmem [#allocation10], %s1375_s29 }
  0x41   : > { %1092 = dma.done.wait (%p1333_p10), %s323_s10, 256  }
  0x42   : > { %1094 = vsyncadd (%p1333_p10), %s323_s10, 4294967040  ;;  %p380_p5 = scmp.lt.s32.totalorder %s1129_s28, 1  ;;  %s1549_s5 = sld [smem:[#allocation24_spill]] }
  0x43   : > { %s336_s15 = scalar_lea.vmem [#allocation12], %s1375_s29  ;;  %s377_s13 = scalar_lea.vmem [#allocation13], %s1365_s8 }
  0x44   : > { %s381_s3 = scalar_select %p380_p5, %s1129_s28, 1 }
  0x45   : > { %s1550_s4 = sld [smem:[#allocation17_spill]] }
  0x46   : > { %s770_s14 = sshll.u32 %s381_s3, 1 }
  0x48   : > { %s1387_s19 = scalar_lea.vmem %s1549_s5, %s770_s14 }
  0x4b   : > { %p771_p7 = scmp.ne.s32.totalorder %s1550_s4, 0 }
  0x4c   : > { %s1551_s11 = sld [smem:[#allocation25_spill]] (!%p771_p7) }
  0x4d   : > { %387 = sbr.rel (%p771_p7) target bundleno = 219 (0xdb), region = 60 }
  0x52   : > { %v392_v0 = vld [vmem:[%s1551_s11 + $0x18] sm:$0xff]  ;;  %v391_v1 = vld [vmem:[%s1551_s11 + $0x10] sm:$0xff]  ;;  %v390_v2 = vld [vmem:[%s1551_s11 + $0x8] sm:$0xff]  ;;  %vm394_vm0 = vcmask 261120   ;;  %vm418_vm1 = vcmask 253952   ;;  %vm422_vm2 = vcmask 0  }
  0x53   : > { %410 = vmatpush.msra.mxu0 %v392_v0  ;;  %v389_v3 = vld [vmem:[%s1551_s11] sm:$0xff]  ;;  %v1145_v6 = vmov -inf   ;;  %v1146_v7 = vmov 0.0  }
  0x54   : > { %v388_v4 = vld [vmem:[%s316_s17] sm:$0x1]  ;;  %v420_v5 = vld [vmem:[%s1551_s11 + $0x21] sm:$0x1]  ;;  %423 = vst.msk [vmem:[#allocation4] sm:$0x1] %vm422_vm2, %v1145_v6 }
  0x55   : > { %411 = vmatpush.msra.mxu0 %v391_v1  ;;  %421 = vst.msk [vmem:[#allocation3] sm:$0x1] %vm418_vm1, %v420_v5  ;;  %v393_v8 = vld [vmem:[%s1551_s11 + $0x20] sm:$0x1] }
  0x56   : > { %424 = vst.msk [vmem:[#allocation5] sm:$0x1] %vm422_vm2, %v1146_v7 }
  0x57   : > { %412 = vmatpush.msra.mxu0 %v390_v2  ;;  %425 = vst.msk [vmem:[#allocation6] sm:$0x1] %vm418_vm1, %v1146_v7 }
  0x59   : > { %413 = vmatpush.msra.mxu0 %v389_v3 }
  0x5a   : > { %772 = vmatmul.msk.f32.vlgmr.msra.gmra.mxu0 %vm394_vm0, %v388_v4 }
  0xd7   : > { %v415_v9 = vpop.f32.mrf.mxu0 }
  0xd8   : > { %v416_v10 = vadd.f32 %v415_v9, %v393_v8 }
  0xda   : > { %419 = vst.msk [vmem:[#allocation2] sm:$0x1] %vm418_vm1, %v416_v10 }
  0xdb PF: > { %v782_v11 = vld [vmem:[%s336_s15] sm:$0xff]   ;;  %vm439_vm3 = vcmask 261120   ;;  %vm470_vm4 = vcmask 122880   ;;  %v1147_v22 = vmov 0   ;;  %vm493_vm5 = vcmask 0   ;;  %s1552_s15 = sld [smem:[#allocation17_spill]] }
  0xdc   : > { %v783_v13 = vunpack.c.l.bf16 %v782_v11  ;;  %v784_v14 = vunpack.c.h.bf16 %v782_v11  ;;  %v438_v19 = vld [vmem:[#allocation3] sm:$0x1]  ;;  %908 = vset.pattern.permute.xlu0 %v1147_v22  ;;  %909 = vset.pattern.permute.xlu1 %v1147_v22  ;;  %v469_v23 = vld [vmem:[#allocation4] sm:$0x1]  ;;  %v786_v29 = vld [vmem:[%s326_s6] sm:$0xff]   ;;  %vm510_vm6 = vcmask 130048  }
  0xdd   : > { %v788_v30 = vunpack.c.h.bf16 %v786_v29  ;;  %v787_v31 = vunpack.c.l.bf16 %v786_v29  ;;  %v487_v41 = vld [vmem:[#allocation5] sm:$0x1]  ;;  %v498_v46 = vld [vmem:[#allocation6] sm:$0x1]  ;;  %vm535_vm7 = vcmask 253952  }
  0xdf   : > { %528 = vmatpush.msra.mxu1 %v788_v30 }
  0xe1   : > { %v910_v12 = vld [vmem:[#allocation2] ss:$0 sm:$0xff]  ;;  %529 = vmatpush.msra.mxu1 %v787_v31  ;;  %s495_s27 = scalar_lea.vmem %s1387_s19, %s1552_s15  ;;  %p777_p11 = scmp.ne.s32.totalorder %s1552_s15, 1 }
  0xe2   : > { %v435_v15 = vadd.f32 %v910_v12, %v784_v14  ;;  %v434_v16 = vadd.f32 %v910_v12, %v783_v13  ;;  %v496_v36 = vld [vmem:[%s495_s27] sm:$0x1]  ;;  %s1149_s29 = smov (!%p777_p11), 32   ;;  %s1553_s1 = sld [smem:[#allocation26_spill]] (!%p777_p11) }
  0xe4   : > { %911 = vtanh.f32 %v435_v15 }
  0xe5   : > { %913 = vtanh.f32 %v434_v16 }
  0xea   : > { %v912_v17 = vpop.eup %911 }
  0xeb   : > { %773 = vmatpush.xpose.msk.msra.mxu0 %vm439_vm3, %v912_v17  ;;  %v914_v18 = vpop.eup %913 }
  0xef   : > { %774 = vmatpush.xpose.msk.msra.mxu0 %vm439_vm3, %v914_v18 }
  0xf2   : > { %775 = vmatmul.msk.f32.vlgmr.msra.gmra.mxu0 %vm439_vm3, %v438_v19 }
 0x16f   : > { %v466_v20 = vpop.f32.mrf.mxu0 }
 0x170   : > { %v471_v21 = vsel %vm470_vm4, %v466_v20, -inf }
 0x171   : > { %472 = vmax.xlane.f32.xlu0 %v471_v21 }
 0x1e4   : > { %v473_v24 = vpop.xlane.xlu0 %472 }
 0x1e5   : > { %v474_v25 = vmax.f32 %v469_v23, %v473_v24 }
 0x1e7   : > { %v475_v26 = vsub.f32 %v469_v23, %v474_v25  ;;  %537 = vst.msk [vmem:[#allocation4] sm:$0x1] %vm493_vm5, %v474_v25  ;;  %480 = vperm.xlu0 %908, %v474_v25  }
 0x1e9   : > { %v476_v27 = vmul.f32 1.442695, %v475_v26 }
 0x1eb   : > { %915 = vpow2.f32 %v476_v27 }
 0x1f1   : > { %v916_v28 = vpop.eup %915 }
 0x1f2   : > { %501 = vperm.xlu1 %909, %v916_v28   ;;  %v488_v42 = vmul.f32 %v916_v28, %v487_v41 }
 0x259   : > { %v481_v32 = vpop.permute.xlu0 %480 }
 0x25a   : > { %v483_v33 = vperm.slane %v481_v32, 0 }
 0x25c   : > { %v484_v34 = vsub.f32 %v466_v20, %v483_v33 }
 0x25e   : > { %v485_v35 = vmul.f32 1.442695, %v484_v34 }
 0x260   : > { %917 = vpow2.f32 %v485_v35 }
 0x264   : > { %v502_v40 = vpop.permute.xlu1 %501 }
 0x265   : > { %v504_v45 = vperm.slane %v502_v40, 0 }
 0x266   : > { %v918_v37 = vpop.eup %917 }
 0x267   : > { %v489_v38 = vsel %vm470_vm4, %v918_v37, 0.0  ;;  %v497_v39 = vmul.f32 %v918_v37, %v496_v36  ;;  %v505_v47 = vmul.f32 %v504_v45, %v498_v46 }
 0x268   : > { %490 = vadd.xlane.f32.xlu1 %v489_v38 }
 0x269   : > { %776 = vmatmul.msk.f32.vlgmr.msra.gmra.mxu1 %vm510_vm6, %v497_v39 }
 0x2db   : > { %v491_v43 = vpop.xlane.xlu1 %490 }
 0x2dc   : > { %v492_v44 = vadd.f32 %v491_v43, %v488_v42 }
 0x2de   : > { %494 = vst.msk [vmem:[#allocation5] sm:$0x1] %vm493_vm5, %v492_v44 }
 0x2e5   : > { %541 = sbr.rel (%p777_p11) target bundleno = 1021 (0x3fd), region = 64 }
 0x2e6   : > { %v531_v48 = vpop.f32.mrf.mxu1 }
 0x2e7   : > { %v534_v49 = vadd.f32 %v531_v48, %v505_v47 }
 0x2e9   : > { %536 = vst.msk [vmem:[#allocation6] sm:$0x1] %vm535_vm7, %v534_v49 }
 0x2ea   : > { %v543_v50 = vld [vmem:[#allocation5] sm:$0x1]  ;;  %v1148_v51 = vmov 0   ;;  %v920_v52 = vld [vmem:[%s316_s17] ss:$0 sm:$0xff]  ;;  %v579_v53 = vld [vmem:[%s1553_s1 + $0x38] sm:$0xff] }
 0x2eb   : > { %919 = vset.pattern.permute.xlu0 %v1148_v51  ;;  %593 = vmatpush.msra.mxu0 %v579_v53  ;;  %v578_v54 = vld [vmem:[%s1553_s1 + $0x30] sm:$0xff]  ;;  %v577_v55 = vld [vmem:[%s1553_s1 + $0x28] sm:$0xff]  ;;  %v576_v56 = vld [vmem:[%s1553_s1 + $0x20] sm:$0xff]  ;;  %vm581_vm12 = vcmask 523264  }
 0x2ec   : > { %546 = vperm.xlu0 %919, %v543_v50   ;;  %v575_v57 = vld [vmem:[%s1553_s1 + $0x18] sm:$0xff]  ;;  %v574_v58 = vld [vmem:[%s1553_s1 + $0x10] sm:$0xff]  ;;  %v573_v59 = vld [vmem:[%s1553_s1 + $0x8] sm:$0xff] }
 0x2ed   : > { %594 = vmatpush.msra.mxu0 %v578_v54  ;;  %v572_v60 = vld [vmem:[%s1553_s1] sm:$0xff] }
 0x2ee   : > { %v580_v13 = vld [vmem:[%s1553_s1 + $0x40] sm:$0x1] }
 0x2ef   : > { %595 = vmatpush.msra.mxu0 %v577_v55 }
 0x2f0   : > { %v542_v7 = vld [vmem:[#allocation6] sm:$0x1] }
 0x2f1   : > { %596 = vmatpush.msra.mxu0 %v576_v56 }
 0x2f3   : > { %597 = vmatpush.msra.mxu0 %v575_v57 }
 0x2f4   : > { %568 = vrot.lane.b32.xlu0 %v920_v52, %s1149_s29 }
 0x2f5   : > { %598 = vmatpush.msra.mxu0 %v574_v58 }
 0x2f7   : > { %599 = vmatpush.msra.mxu0 %v573_v59 }
 0x2f9   : > { %600 = vmatpush.msra.mxu0 %v572_v60 }
 0x35e   : > { %v547_v61 = vpop.permute.xlu0 %546 }
 0x35f   : > { %v549_v62 = vperm.slane %v547_v61, 0 }
 0x361   : > { %921 = vrcp.f32 %v549_v62  ;;  %v561_v2 = vand.u32 2147483648, %v549_v62  ;;  %v559_v4 = vand.u32 2147483647, %v549_v62  ;;  %vm555_vm9 = vweird.f32 %v549_v62 }
 0x363   : > { %v562_v6 = vor.u32 1.1754944e-38, %v561_v2  ;;  %vm560_vm11 = vcmp.eq.f32.partialorder %v559_v4, 8.507059e+37 }
 0x366   : > { %v569_v10 = vpop.permute.xlu0 %568 }
 0x367   : > { %v922_v63 = vpop.eup %921 }
 0x368   : > { %v551_v0 = vmul.f32 %v922_v63, %v549_v62  ;;  %vm556_vm8 = vweird.f32 %v922_v63 }
 0x369   : > { %vm557_vm10 = vmor %vm555_vm9, %vm556_vm8 }
 0x36a   : > { %v552_v1 = vsub.f32 1.0, %v551_v0 }
 0x36c   : > { %v553_v3 = vmul.f32 %v922_v63, %v552_v1 }
 0x36e   : > { %v554_v5 = vadd.f32 %v922_v63, %v553_v3 }
 0x370   : > { %v558_v8 = vsel %vm557_vm10, %v922_v63, %v554_v5 }
 0x371   : > { %v563_v9 = vsel %vm560_vm11, %v562_v6, %v558_v8 }
 0x372   : > { %v564_v11 = vmul.f32 %v563_v9, %v542_v7 }
 0x374   : > { %v571_v12 = vsel %vm439_vm3, %v564_v11, %v569_v10 }
 0x375   : > { %778 = vmatmul.msk.f32.vlgmr.msra.gmra.mxu0 %vm581_vm12, %v571_v12 }
 0x3f2   : > { %v602_v14 = vpop.f32.mrf.mxu0 }
 0x3f3   : > { %v603_v15 = vadd.f32 %v602_v14, %v580_v13 }
 0x3f5   : > { %923 = vtanh.f32 %v603_v15 }
 0x3fb   : > { %v924_v16 = vpop.eup %923 }
 0x3fc   : > { %606 = vst [vmem:[%s377_s13] sm:$0x1] %v924_v16 }
 0x3fd PF: > { %s1554_s14 = sld [smem:[#allocation27_spill]]  ;;  %s618_s18 = sshll.u32 %s377_s13, 4  ;;  %s619_s18 = int_to_ptr.vmem [resolvable:$true] %s618_s18 }
 0x3fe   : > { %s608_s5 = scalar_lea.sflag [#allocation9], %s1365_s8 }
 0x403   : > { %s616_s16 = scalar_lea.hbm %s1554_s14, %s1129_s28  ;;  %s1035_s29 = scalar_lea.hbm %s1554_s14, 2 }
 0x404   : > { %s620_s17 = sshll.u32 %s616_s16, 4  ;;  %s621_s17 = int_to_ptr.hbm [resolvable:$true] %s620_s17 }
 0x405   : > { %s1029_s4 = sshra.s32 %s621_s17, 4  ;;  %s1030_s4 = int_to_ptr.hbm [resolvable:$true] %s1029_s4 }
 0x406   : > { %s1031_s21 = scalar_lea.hbm %s1030_s4, 1  ;;  %p1036_p3 = scmp.lt.s32.totalorder %s1030_s4, %s1554_s14 }
 0x407   : > { %p1032_p13 = scmp.ne.s32.totalorder %s1030_s4, %s1031_s21  ;;  %p1037_p4 = scmp.lt.s32.totalorder %s1035_s29, %s1031_s21 }
 0x409   : > { %p1033_p0 = pnand %p1032_p13, %p1337_p1  ;;  %p1038_p6 = por %p1037_p4, %p1036_p3 }
 0x40b   : > { %p1034_p2 = pneg %p1033_p0 }
 0x40d   : > { %p1039_p9 = pnand %p1038_p6, %p1034_p2 }
 0x40f   : > { %1042 = shalt.err (!%p1039_p9)
}
 0x410   : > { %795 = dma.vmem_to_hbm [thread:$0]  (%p1337_p1), %s619_s18, 16, %s621_s17, %s608_s5  }
 0x411 PF: > { %p812_p10 = scmp.ge.s32.totalorder %s1141_s7, 2  ;;  %s632_s28 = sand.u32 1, %s1113_s24  }
 0x412   : > { %s633_s8 = scalar_lea.sflag [#allocation9], %s632_s28 }
 0x413   : > { %p808_p8 = pnand %p812_p10, %p1341_p12 }
 0x415   : > { %p809_p5 = pneg %p808_p8 }
 0x417   : > { %1096 = dma.done.wait (%p809_p5), %s633_s8, 16  }
 0x418   : > { %1098 = vsyncadd (%p809_p5), %s633_s8, 4294967280  ;;  %s25_s7 = sadd.s32 1, %s1141_s7   ;;  %s1555_s9 = sld [smem:[#allocation21_spill]] }
 0x419   : > { %p22_p7 = scmp.ge.s32.totalorder %s25_s7, 6   ;;  %s1556_s27 = sld [smem:[#allocation18_spill]] }
 0x41a   : > { %s1557_s29 = sld [smem:[#allocation19_spill]]  ;;  %s1559_s21 = smov %s1105_s22 }
 0x41b   : > { %s1558_s13 = sld [smem:[#allocation20_spill]]  ;;  %s1560_s22 = smov %s1109_s23 }
 0x41c   : > { %s1561_s23 = smov %s1270_s20  ;;  %s1562_s24 = smov %s1117_s25 }
 0x41d   : > { %s1563_s25 = smov %s1121_s26  ;;  %s1565_s28 = smov %s1137_s30 }
 0x41e   : > { %s1564_s26 = smov %s1555_s9  ;;  %24 = sbr.rel (!%p22_p7) target bundleno = 18 (0x12), region = 125 }
 0x421   : > { %s1566_s30 = smov %s1558_s13 }
 0x423   :  { %638 = vsyncpa [#allocation8], 1 }
 0x424   :  { %640 = vsyncpa [#allocation8 + $0x1], 1 }
 0x425   :  { %641 = vsyncpa [#allocation11], 1 }
 0x426   :  { %643 = vsyncpa [#allocation11 + $0x1], 1 }
 0x427   :  { %644 = vsyncpa [#allocation9], 1 }
 0x428   :  { %646 = vsyncpa [#allocation9 + $0x1], 1 }

</bundles_post_ra>
